<compile_context>
chip_gen: v7x
topology: tpu7x:2x2x1
jax: 0.10.0
libtpu: 0.0.40
codegen_flags: <defaults>
</compile_context>

<pallas_src>
import functools

import numpy as np
import jax
import jax.numpy as jnp
from jax.experimental import pallas as pl
from jax.experimental.pallas import tpu as pltpu

EPS = 1e-6  # timm ViT LayerNorm eps


# ----------------------------------------------------------------------------
# Tiling helper
# ----------------------------------------------------------------------------
def _pick_tile(dim, target):
    """Largest divisor of `dim` <= target, preferring multiples of 128."""
    if dim <= target:
        return dim
    best128 = 0
    for t in range(128, target + 1, 128):
        if dim % t == 0:
            best128 = t
    if best128:
        return best128
    for t in range(target, 0, -1):
        if dim % t == 0:
            return t
    return dim


# ----------------------------------------------------------------------------
# Pallas kernels
# ----------------------------------------------------------------------------
def _mm_kernel(x_ref, w_ref, b_ref, *rest, activation, has_residual):
    """K-tiled matmul with f32 accumulator; bias/GELU/residual fused in epilogue."""
    if has_residual:
        res_ref, o_ref, acc_ref = rest
    else:
        o_ref, acc_ref = rest

    @pl.when(pl.program_id(2) == 0)
    def _():
        acc_ref[...] = jnp.zeros_like(acc_ref)

    acc_ref[...] += jnp.dot(
        x_ref[...].astype(jnp.bfloat16),
        w_ref[...].astype(jnp.bfloat16),
        preferred_element_type=jnp.float32,
    )

    @pl.when(pl.program_id(2) == pl.num_programs(2) - 1)
    def _():
        y = acc_ref[...] + b_ref[...].astype(jnp.float32)
        if activation == "gelu":
            # TODO(synk): PyTorch nn.GELU() is the exact erf form; tanh approx is
            # used to guarantee Mosaic lowering (difference ~1e-3).
            y = jax.nn.gelu(y, approximate=True)
        if has_residual:
            y = y + res_ref[...].astype(jnp.float32)
        o_ref[...] = y.astype(o_ref.dtype)


def matmul_bias(x, w, b, activation=None, residual=None):
    M, K = x.shape
    N = w.shape[1]
    tm = _pick_tile(M, 256)
    tn = _pick_tile(N, 256)
    tk = _pick_tile(K, 512)
    grid = (M // tm, N // tn, K // tk)

    in_specs = [
        pl.BlockSpec((tm, tk), lambda i, j, k: (i, k)),
        pl.BlockSpec((tk, tn), lambda i, j, k: (k, j)),
        pl.BlockSpec((1, tn), lambda i, j, k: (0, j)),
    ]
    args = [x, w, b.reshape(1, N)]
    if residual is not None:
        in_specs.append(pl.BlockSpec((tm, tn), lambda i, j, k: (i, j)))
        args.append(residual)

    return pl.pallas_call(
        functools.partial(_mm_kernel, activation=activation,
                          has_residual=residual is not None),
        out_shape=jax.ShapeDtypeStruct((M, N), x.dtype),
        grid=grid,
        in_specs=in_specs,
        out_specs=pl.BlockSpec((tm, tn), lambda i, j, k: (i, j)),
        scratch_shapes=[pltpu.VMEM((tm, tn), jnp.float32)],
        compiler_params=pltpu.CompilerParams(
            dimension_semantics=("parallel", "parallel", "arbitrary")),
    )(*args)


def _ln_mm_kernel(x_ref, g_ref, bln_ref, w_ref, b_ref, o_ref, *, activation):
    """Fused row-LayerNorm (f32 stats) -> bf16 matmul -> bias (+GELU)."""
    x = x_ref[...].astype(jnp.float32)                    # (tm, K) full K
    mu = jnp.mean(x, axis=-1, keepdims=True)
    xc = x - mu
    var = jnp.mean(xc * xc, axis=-1, keepdims=True)
    h = xc * jax.lax.rsqrt(var + EPS) * g_ref[...] + bln_ref[...]
    y = jnp.dot(h.astype(jnp.bfloat16),
                w_ref[...].astype(jnp.bfloat16),
                preferred_element_type=jnp.float32)
    y = y + b_ref[...].astype(jnp.float32)
    if activation == "gelu":
        y = jax.nn.gelu(y, approximate=True)
    o_ref[...] = y.astype(o_ref.dtype)


def ln_matmul_bias(x, g, bln, w, b, activation=None):
    M, K = x.shape
    N = w.shape[1]
    tm = _pick_tile(M, 256)
    tn = _pick_tile(N, 256)
    grid = (M // tm, N // tn)
    return pl.pallas_call(
        functools.partial(_ln_mm_kernel, activation=activation),
        out_shape=jax.ShapeDtypeStruct((M, N), x.dtype),
        grid=grid,
        in_specs=[
            pl.BlockSpec((tm, K), lambda i, j: (i, 0)),
            pl.BlockSpec((1, K), lambda i, j: (0, 0)),
            pl.BlockSpec((1, K), lambda i, j: (0, 0)),
            pl.BlockSpec((K, tn), lambda i, j: (0, j)),
            pl.BlockSpec((1, tn), lambda i, j: (0, j)),
        ],
        out_specs=pl.BlockSpec((tm, tn), lambda i, j: (i, j)),
        compiler_params=pltpu.CompilerParams(
            dimension_semantics=("parallel", "parallel")),
    )(x, g.reshape(1, K), bln.reshape(1, K), w, b.reshape(1, N))


def _layernorm_kernel(x_ref, g_ref, b_ref, o_ref):
    x = x_ref[...].astype(jnp.float32)
    mu = jnp.mean(x, axis=-1, keepdims=True)
    xc = x - mu
    var = jnp.mean(xc * xc, axis=-1, keepdims=True)
    y = xc * jax.lax.rsqrt(var + EPS)
    o_ref[...] = (y * g_ref[...] + b_ref[...]).astype(o_ref.dtype)


def layernorm(x2d, g, b):
    M, D = x2d.shape
    tm = _pick_tile(M, 512)
    return pl.pallas_call(
        _layernorm_kernel,
        out_shape=jax.ShapeDtypeStruct((M, D), x2d.dtype),
        grid=(M // tm,),
        in_specs=[
            pl.BlockSpec((tm, D), lambda i: (i, 0)),
            pl.BlockSpec((1, D), lambda i: (0, 0)),
            pl.BlockSpec((1, D), lambda i: (0, 0)),
        ],
        out_specs=pl.BlockSpec((tm, D), lambda i: (i, 0)),
        compiler_params=pltpu.CompilerParams(dimension_semantics=("parallel",)),
    )(x2d, g.reshape(1, D), b.reshape(1, D))


def _attn_kernel(qkv_ref, o_ref, *, scale, num_heads):
    # qkv_ref block: [1, N, 3, nh, Dh]; all heads of one batch element per step.
    # q/k/v are taken via strided ref slices (no HBM transpose anywhere).
    for h in range(num_heads):
        q = qkv_ref[0, :, 0, h, :].astype(jnp.bfloat16)   # [N, Dh]
        k = qkv_ref[0, :, 1, h, :].astype(jnp.bfloat16)   # [N, Dh]
        v = qkv_ref[0, :, 2, h, :].astype(jnp.bfloat16)   # [N, Dh]
        # Contract on Dh without materializing K^T.
        s = jax.lax.dot_general(
            q, k, dimension_numbers=(((1,), (1,)), ((), ())),
            preferred_element_type=jnp.float32) * scale
        s = s - jnp.max(s, axis=-1, keepdims=True)
        p = jnp.exp(s)
        p = p * pl.reciprocal(jnp.sum(p, axis=-1, keepdims=True), approx=True)
        o = jnp.dot(p.astype(jnp.bfloat16), v, preferred_element_type=jnp.float32)
        o_ref[0, :, h, :] = o.astype(o_ref.dtype)


def attention(qkv5, scale):
    B, N, _, nh, Dh = qkv5.shape
    # TODO(synk): for real sizes (N=197), pad N to 256 with -inf key masking for
    # lane-dense score tiles; unnecessary / skipped at this scale.
    return pl.pallas_call(
        functools.partial(_attn_kernel, scale=scale, num_heads=nh),
        out_shape=jax.ShapeDtypeStruct((B, N, nh, Dh), qkv5.dtype),
        grid=(B,),
        in_specs=[pl.BlockSpec((1, N, 3, nh, Dh), lambda b: (b, 0, 0, 0, 0))],
        out_specs=pl.BlockSpec((1, N, nh, Dh), lambda b: (b, 0, 0, 0)),
        compiler_params=pltpu.CompilerParams(dimension_semantics=("parallel",)),
    )(qkv5)


# ----------------------------------------------------------------------------
# Parameter setup (deterministic, plain JAX / numpy glue)
# ----------------------------------------------------------------------------
def _sincos_1d(embed_dim, pos):
    omega = np.arange(embed_dim // 2, dtype=np.float64) / (embed_dim / 2.0)
    omega = 1.0 / (10000.0 ** omega)
    out = np.einsum("m,d->md", pos, omega)
    return np.concatenate([np.sin(out), np.cos(out)], axis=1)


def sincos_2d_pos_embed(embed_dim, gh, gw):
    grid_h = np.arange(gh, dtype=np.float64)
    grid_w = np.arange(gw, dtype=np.float64)
    grid = np.meshgrid(grid_w, grid_h)            # w first (MAE convention)
    grid = np.stack(grid, axis=0).reshape(2, -1)  # [2, gh*gw]
    emb_h = _sincos_1d(embed_dim // 2, grid[0])
    emb_w = _sincos_1d(embed_dim // 2, grid[1])
    pos = np.concatenate([emb_h, emb_w], axis=1)  # [gh*gw, D]
    pos = np.concatenate([np.zeros((1, embed_dim)), pos], axis=0)  # CLS slot
    return jnp.asarray(pos, dtype=jnp.float32)


def init_params(key, *, in_chans, patch, img_size, embed_dim, depth,
                num_heads, mlp_ratio):
    gh, gw = img_size[0] // patch, img_size[1] // patch
    hidden = int(embed_dim * mlp_ratio)
    keys = iter(jax.random.split(key, 4 + depth * 6))

    def w_init(k, shape):
        return (0.02 * jax.random.normal(k, shape)).astype(jnp.float32)

    params = {
        "patch_size": patch,
        "embed_dim": embed_dim,
        "num_heads": num_heads,
        "patch_w": w_init(next(keys), (in_chans * patch * patch, embed_dim)),
        "patch_b": jnp.zeros((embed_dim,), jnp.float32),
        "cls_token": w_init(next(keys), (1, embed_dim)),
        "pos_embed": sincos_2d_pos_embed(embed_dim, gh, gw),  # fixed sin-cos
        "norm_g": jnp.ones((embed_dim,), jnp.float32),
        "norm_b": jnp.zeros((embed_dim,), jnp.float32),
        "blocks": [],
    }
    for _ in range(depth):
        blk = {
            "ln1_g": jnp.ones((embed_dim,), jnp.float32),
            "ln1_b": jnp.zeros((embed_dim,), jnp.float32),
            "qkv_w": w_init(next(keys), (embed_dim, 3 * embed_dim)),
            "qkv_b": jnp.zeros((3 * embed_dim,), jnp.float32),
            "proj_w": w_init(next(keys), (embed_dim, embed_dim)),
            "proj_b": jnp.zeros((embed_dim,), jnp.float32),
            "ln2_g": jnp.ones((embed_dim,), jnp.float32),
            "ln2_b": jnp.zeros((embed_dim,), jnp.float32),
            "fc1_w": w_init(next(keys), (embed_dim, hidden)),
            "fc1_b": jnp.zeros((hidden,), jnp.float32),
            "fc2_w": w_init(next(keys), (hidden, embed_dim)),
            "fc2_b": jnp.zeros((embed_dim,), jnp.float32),
        }
        params["blocks"].append(blk)
    return params


# ----------------------------------------------------------------------------
# Forward pass (glue is only free reshapes + patchify; compute is in Pallas)
# ----------------------------------------------------------------------------
def vit_forward(params, x, use_mean_pool=False):
    B, C, H, W = x.shape
    p = params["patch_size"]
    D = params["embed_dim"]
    nh = params["num_heads"]
    Dh = D // nh
    gh, gw = H // p, W // p
    L = gh * gw
    N = L + 1

    # Patch embed: 16x16/stride-16 conv == per-patch flatten (C, kh, kw) + matmul.
    patches = (x.reshape(B, C, gh, p, gw, p)
                 .transpose(0, 2, 4, 1, 3, 5)
                 .reshape(B * L, C * p * p))
    tok = matmul_bias(patches, params["patch_w"], params["patch_b"])  # [B*L, D]
    tok = tok.reshape(B, L, D) + params["pos_embed"][1:][None]

    # TODO(synk): MAE random masking (mask_ratio > 0) and masked_recon decoder
    # path are not implemented; with mask_ratio=0 they are no-ops for this output.
    cls = params["cls_token"] + params["pos_embed"][:1]
    seq = jnp.concatenate([jnp.broadcast_to(cls[None], (B, 1, D)), tok], axis=1)

    xf = seq.reshape(B * N, D)
    scale = Dh ** -0.5
    for blk in params["blocks"]:
        # --- attention sub-block (LN fused into QKV matmul) ---
        qkv = ln_matmul_bias(xf, blk["ln1_g"], blk["ln1_b"],
                             blk["qkv_w"], blk["qkv_b"])        # [B*N, 3D]
        qkv5 = qkv.reshape(B, N, 3, nh, Dh)                     # free reshape
        a = attention(qkv5, scale)                              # [B, N, nh, Dh]
        a = a.reshape(B * N, D)                                 # free reshape
        xf = matmul_bias(a, blk["proj_w"], blk["proj_b"], residual=xf)
        # --- MLP sub-block (LN fused into fc1, residual fused into fc2) ---
        h = ln_matmul_bias(xf, blk["ln2_g"], blk["ln2_b"],
                           blk["fc1_w"], blk["fc1_b"], activation="gelu")
        xf = matmul_bias(h, blk["fc2_w"], blk["fc2_b"], residual=xf)

    xf = layernorm(xf, params["norm_g"], params["norm_b"])
    seq = xf.reshape(B, N, D)
    if use_mean_pool:
        return jnp.mean(seq[:, 1:, :], axis=1)   # mean over patch tokens
    return seq[:, 0, :]                          # CLS embedding [B, D]


# ----------------------------------------------------------------------------
if __name__ == "__main__":
    # Small, forward-consistent config: 32x32 image, 3 channels, 16x16 patches
    # -> 4 patches (+ CLS = 5 tokens), embed_dim 32, 2 blocks, 4 heads.
    B, C, H, W = 2, 3, 32, 32
    key = jax.random.PRNGKey(0)
    k_param, k_x = jax.random.split(key)

    params = init_params(
        k_param, in_chans=C, patch=16, img_size=(H, W),
        embed_dim=32, depth=2, num_heads=4, mlp_ratio=4.0)

    x = jax.random.normal(k_x, (B, C, H, W), dtype=jnp.float32)

    out = vit_forward(params, x, use_mean_pool=False)  # mask_ratio=0 path
    out = jax.block_until_ready(out)
    assert out.shape == (B, 32), out.shape
    print("KERNEL_OK")
</pallas_src>

<mosaic_0001>
module attributes {stable_mosaic.version = 11 : i64} {
  func.func @_mm_kernel(%arg0: i32, %arg1: i32, %arg2: i32, %arg3: memref<8x384xf32, #tpu.memory_space<vmem>>, %arg4: memref<384x32xf32, #tpu.memory_space<vmem>>, %arg5: memref<1x32xf32, #tpu.memory_space<vmem>>, %arg6: memref<8x32xf32, #tpu.memory_space<vmem>>, %arg7: memref<8x32xf32, #tpu.memory_space<vmem>>) attributes {dimension_semantics = [#tpu.dimension_semantics<parallel>, #tpu.dimension_semantics<parallel>, #tpu.dimension_semantics<arbitrary>], iteration_bounds = array<i64: 1, 1, 2>, scalar_prefetch = 0 : i64, scratch_operands = 1 : i64, tpu.core_type = #tpu.core_type<tc>, window_params = [{transform_indices = @transform_0, window_bounds = array<i64: 8, 384>}, {transform_indices = @transform_1, window_bounds = array<i64: 384, 32>}, {transform_indices = @transform_2, window_bounds = array<i64: 1, 32>}, {transform_indices = @transform_3, window_bounds = array<i64: 8, 32>}]} {
    %c0_i32 = arith.constant 0 : i32
    %0 = arith.cmpi eq, %arg2, %c0_i32 : i32
    %1 = arith.extui %0 : i1 to i32
    %c0_i32_0 = arith.constant 0 : i32
    %2 = arith.cmpi ne, %1, %c0_i32_0 : i32
    scf.if %2 {
      %cst_9 = arith.constant 0.000000e+00 : f32
      %14 = vector.broadcast %cst_9 : f32 to vector<8x32xf32>
      %c0_10 = arith.constant 0 : index
      %c0_11 = arith.constant 0 : index
      %15 = vector.load %arg7[%c0_10, %c0_11] : memref<8x32xf32, #tpu.memory_space<vmem>>, vector<8x32xf32>
      tpu.vector_store %arg7[%c0_10, %c0_11], %14 {strides = array<i32>} : memref<8x32xf32, #tpu.memory_space<vmem>>, vector<8x32xf32>,
    } else {
    }
    %c0 = arith.constant 0 : index
    %c0_1 = arith.constant 0 : index
    %3 = vector.load %arg7[%c0, %c0_1] : memref<8x32xf32, #tpu.memory_space<vmem>>, vector<8x32xf32>
    %c0_2 = arith.constant 0 : index
    %c0_3 = arith.constant 0 : index
    %4 = vector.load %arg3[%c0_2, %c0_3] : memref<8x384xf32, #tpu.memory_space<vmem>>, vector<8x384xf32>
    %5 = arith.truncf %4 : vector<8x384xf32> to vector<8x384xbf16>
    %c0_4 = arith.constant 0 : index
    %c0_5 = arith.constant 0 : index
    %6 = vector.load %arg4[%c0_4, %c0_5] : memref<384x32xf32, #tpu.memory_space<vmem>>, vector<384x32xf32>
    %7 = arith.truncf %6 : vector<384x32xf32> to vector<384x32xbf16>
    %cst = arith.constant dense<0.000000e+00> : vector<8x32xf32>
    %8 = tpu.matmul %5, %7, %cst {dimension_numbers = #tpu.dot_dimension_numbers<[1], [0], [0], [1], [0, 0, 1, 1], [], []>} : vector<8x384xbf16>, vector<384x32xbf16>, vector<8x32xf32> -> vector<8x32xf32>
    %9 = arith.addf %3, %8 : vector<8x32xf32>
    %c0_6 = arith.constant 0 : index
    %c0_7 = arith.constant 0 : index
    %10 = vector.load %arg7[%c0_6, %c0_7] : memref<8x32xf32, #tpu.memory_space<vmem>>, vector<8x32xf32>
    tpu.vector_store %arg7[%c0_6, %c0_7], %9 {strides = array<i32>} : memref<8x32xf32, #tpu.memory_space<vmem>>, vector<8x32xf32>,
    %c1_i32 = arith.constant 1 : i32
    %11 = arith.cmpi eq, %arg2, %c1_i32 : i32
    %12 = arith.extui %11 : i1 to i32
    %c0_i32_8 = arith.constant 0 : i32
    %13 = arith.cmpi ne, %12, %c0_i32_8 : i32
    scf.if %13 {
      %c0_9 = arith.constant 0 : index
      %c0_10 = arith.constant 0 : index
      %14 = vector.load %arg7[%c0_9, %c0_10] : memref<8x32xf32, #tpu.memory_space<vmem>>, vector<8x32xf32>
      %c0_11 = arith.constant 0 : index
      %c0_12 = arith.constant 0 : index
      %15 = vector.load %arg5[%c0_11, %c0_12] : memref<1x32xf32, #tpu.memory_space<vmem>>, vector<1x32xf32>
      %16 = vector.broadcast %15 : vector<1x32xf32> to vector<8x32xf32>
      %17 = arith.addf %14, %16 : vector<8x32xf32>
      %c0_13 = arith.constant 0 : index
      %c0_14 = arith.constant 0 : index
      %18 = vector.load %arg6[%c0_13, %c0_14] : memref<8x32xf32, #tpu.memory_space<vmem>>, vector<8x32xf32>
      tpu.vector_store %arg6[%c0_13, %c0_14], %17 {strides = array<i32>} : memref<8x32xf32, #tpu.memory_space<vmem>>, vector<8x32xf32>,
    } else {
    }
    return
  }
  func.func @transform_0(%arg0: i32, %arg1: i32, %arg2: i32) -> (i32, i32) {
    %c0_i32 = arith.constant 0 : i32
    return %arg0, %arg2 : i32, i32
  }
  func.func @transform_1(%arg0: i32, %arg1: i32, %arg2: i32) -> (i32, i32) {
    %c0_i32 = arith.constant 0 : i32
    return %arg2, %arg1 : i32, i32
  }
  func.func @transform_2(%arg0: i32, %arg1: i32, %arg2: i32) -> (i32, i32) {
    %c0_i32 = arith.constant 0 : i32
    %c0_i32_0 = arith.constant 0 : i32
    return %c0_i32, %arg1 : i32, i32
  }
  func.func @transform_3(%arg0: i32, %arg1: i32, %arg2: i32) -> (i32, i32) {
    %c0_i32 = arith.constant 0 : i32
    return %arg0, %arg1 : i32, i32
  }
}

</mosaic_0001>

<bundles_post_ra>
// kernel: tpu_custom_call.1
= control target key start
LH: loop header
LB: loop body
LE: loop exit
PB: predicated region body
PF: predicated region fallthrough
CT: control target
= control target key end

     0   :  { %8 = vsyncpa [#allocation4], 0  ;;  %s703_s12 = smov 0   ;;  %s705_s13 = smov 0   ;;  %s838_s0 = inlined_call_operand.vmem [shape: f32[8,768], index: 0, kind: input, shape index: {}]   ;;  %s839_s1 = inlined_call_operand.vmem [shape: f32[768,32], index: 1, kind: input, shape index: {}]   ;;  %s840_s2 = inlined_call_operand.vmem [shape: f32[1,32], index: 2, kind: input, shape index: {}]   ;;  %s841_s3 = inlined_call_operand.hbm [shape: f32[8,32], index: 3, kind: output, shape index: {}]  }
   0x1   :  { %s707_s14 = smov 0  }
   0x2 LB: > { %s526_s15 = sadd.s32 4294967295, %s677_s14   ;;  %s26_s16 = sadd.s32 1, %s673_s13  ;;  %s677_s14 = sphi %s707_s14, %s14_s14   ;;  %s673_s13 = sphi %s705_s13, %s844_s13   ;;  %s669_s12 = sphi %s703_s12, %s843_s12  }
   0x3   : > { %p27_p0 = scmp.ge.s32.totalorder %s26_s16, 2  ;;  %p530_p1 = scmp.ge.s32.totalorder %s677_s14, 1 }
   0x4   : > { %p190_p2 = scmp.lt.s32.totalorder %s677_s14, 3 }
   0x5   : > { %s846_s16 = smov (%p27_p0, %s26_s16), 0 }
   0x6   : > { %p191_p3 = pnand %p530_p1, %p190_p2 }
   0x7   : > { %s224_s17 = smul.u32 (!%p191_p3), 3, %s669_s12  ;;  %p533_p6 = scmp.ne.s32.totalorder (!%p191_p3), %s669_s12, 0 }
   0x8   : > { %194 = sbr.rel (%p191_p3) target bundleno = 315 (0x13b), region = 32 }
   0x9   : > { %s234_s18 = smul.u32 (!%p191_p3), 48, %s669_s12  ;;  %p227_p4 = scmp.lt.s32.totalorder (!%p191_p3), %s224_s17, 5 }
   0xb   : > { %p235_p5 = scmp.lt.s32.totalorder (!%p191_p3), %s234_s18, 95 }
   0xf   : > { %s848_s17 = smov (!%p227_p4, %s224_s17), 5  ;;  %s850_s18 = smov (!%p235_p5, %s234_s18), 95 }
  0x10   : > { %s531_s19 = sshll.u32 %s848_s17, 3  ;;  %s532_s23 = sshll.u32 %s850_s18, 3  ;;  %vm251_vm0 = vcmask (!%p533_p6), 261120   ;;  %v679_v0 = vmov (!%p533_p6), 0.0  }
  0x11   : > { %s729_s22 = scalar_lea.vmem %s838_s0, %s531_s19  ;;  %s734_s26 = scalar_lea.vmem %s839_s1, %s532_s23  ;;  %252 = vst.msk [vmem:[#allocation2] sm:$0xff] (!%p533_p6), %vm251_vm0, %v679_v0 }
  0x12   : > { %250 = sbr.rel (%p533_p6) target bundleno = 25 (0x19), region = 36 }
  0x19 PF: > { %v276_v1 = vld [vmem:[%s734_s26 + $0x80] sm:$0xff]  ;;  %v277_v2 = vld [vmem:[%s734_s26 + $0x88] sm:$0xff]  ;;  %v680_v5 = vmov 0.0   ;;  %vm681_vm1 = vmmov 0   ;;  %v278_v11 = vld [vmem:[%s734_s26 + $0x90] sm:$0xff]  ;;  %vm413_vm2 = vcmask 261120  }
  0x1a   : > { %v260_v3 = vld [vmem:[%s734_s26] sm:$0xff]  ;;  %v316_v4 = vpack.c.bf16 %v277_v2, %v276_v1  ;;  %571 = vmatprep.subr.bf16.mxu1 %v680_v5  ;;  %v261_v6 = vld [vmem:[%s734_s26 + $0x8] sm:$0xff]  ;;  %587 = vmatprep.mubr.msk.bf16.mxu1 %vm681_vm1, %v680_v5  ;;  %v279_v12 = vld [vmem:[%s734_s26 + $0x98] sm:$0xff]  ;;  %p534_p7 = scmp.ne.s32.totalorder %s669_s12, 1 }
  0x1b   : > { %v292_v7 = vld [vmem:[%s734_s26 + $0x100] sm:$0xff]  ;;  %v293_v8 = vld [vmem:[%s734_s26 + $0x108] sm:$0xff]  ;;  %v308_v9 = vpack.c.bf16 %v261_v6, %v260_v3  ;;  %v262_v13 = vld [vmem:[%s734_s26 + $0x10] sm:$0xff]  ;;  %v317_v14 = vpack.c.bf16 %v279_v12, %v278_v11 }
  0x1c   : > { %v324_v10 = vpack.c.bf16 %v293_v8, %v292_v7  ;;  %540 = vmatprep.subr.bf16.mxu0 %v316_v4  ;;  %v263_v15 = vld [vmem:[%s734_s26 + $0x18] sm:$0xff]  ;;  %v294_v16 = vld [vmem:[%s734_s26 + $0x110] sm:$0xff]  ;;  %v280_v20 = vld [vmem:[%s734_s26 + $0xa0] sm:$0xff] }
  0x1d   : > { %v295_v17 = vld [vmem:[%s734_s26 + $0x118] sm:$0xff]  ;;  %541 = vmatpush3.bf16.msra.mxu0 %v308_v9  ;;  %v309_v18 = vpack.c.bf16 %v263_v15, %v262_v13  ;;  %v281_v21 = vld [vmem:[%s734_s26 + $0xa8] sm:$0xff]  ;;  %v264_v22 = vld [vmem:[%s734_s26 + $0x20] sm:$0xff] }
  0x1e   : > { %572 = vmatpush3.bf16.msra.mxu1 %v324_v10  ;;  %v325_v19 = vpack.c.bf16 %v295_v17, %v294_v16  ;;  %542 = vmatprep.subr.bf16.mxu0 %v317_v14  ;;  %v318_v23 = vpack.c.bf16 %v281_v21, %v280_v20  ;;  %v265_v24 = vld [vmem:[%s734_s26 + $0x28] sm:$0xff]  ;;  %v296_v25 = vld [vmem:[%s734_s26 + $0x120] sm:$0xff]  ;;  %v282_v27 = vld [vmem:[%s734_s26 + $0xb0] sm:$0xff] }
  0x1f   : > { %573 = vmatprep.subr.bf16.mxu1 %v680_v5  ;;  %v297_v26 = vld [vmem:[%s734_s26 + $0x128] sm:$0xff]  ;;  %v283_v28 = vld [vmem:[%s734_s26 + $0xb8] sm:$0xff]  ;;  %v310_v29 = vpack.c.bf16 %v265_v24, %v264_v22  ;;  %v266_v31 = vld [vmem:[%s734_s26 + $0x30] sm:$0xff] }
  0x20   : > { %v326_v30 = vpack.c.bf16 %v297_v26, %v296_v25  ;;  %v319_v32 = vpack.c.bf16 %v283_v28, %v282_v27  ;;  %v267_v33 = vld [vmem:[%s734_s26 + $0x38] sm:$0xff]  ;;  %v298_v34 = vld [vmem:[%s734_s26 + $0x130] sm:$0xff]  ;;  %v284_v36 = vld [vmem:[%s734_s26 + $0xc0] sm:$0xff] }
  0x21   : > { %543 = vmatpush3.bf16.msra.mxu0 %v309_v18  ;;  %v299_v35 = vld [vmem:[%s734_s26 + $0x138] sm:$0xff]  ;;  %v285_v37 = vld [vmem:[%s734_s26 + $0xc8] sm:$0xff]  ;;  %v311_v38 = vpack.c.bf16 %v267_v33, %v266_v31  ;;  %v268_v40 = vld [vmem:[%s734_s26 + $0x40] sm:$0xff] }
  0x22   : > { %574 = vmatpush3.bf16.msra.mxu1 %v325_v19  ;;  %544 = vmatprep.subr.bf16.mxu0 %v318_v23  ;;  %v327_v39 = vpack.c.bf16 %v299_v35, %v298_v34  ;;  %v320_v41 = vpack.c.bf16 %v285_v37, %v284_v36  ;;  %v269_v42 = vld [vmem:[%s734_s26 + $0x48] sm:$0xff]  ;;  %v300_v43 = vld [vmem:[%s734_s26 + $0x140] sm:$0xff]  ;;  %v286_v45 = vld [vmem:[%s734_s26 + $0xd0] sm:$0xff] }
  0x23   : > { %575 = vmatprep.subr.bf16.mxu1 %v680_v5  ;;  %v301_v44 = vld [vmem:[%s734_s26 + $0x148] sm:$0xff]  ;;  %v287_v46 = vld [vmem:[%s734_s26 + $0xd8] sm:$0xff]  ;;  %v312_v47 = vpack.c.bf16 %v269_v42, %v268_v40  ;;  %v270_v49 = vld [vmem:[%s734_s26 + $0x50] sm:$0xff] }
  0x24   : > { %v328_v48 = vpack.c.bf16 %v301_v44, %v300_v43  ;;  %v255_v50 = vld [vmem:[%s729_s22 + $0x8] sm:$0xff]  ;;  %v321_v51 = vpack.c.bf16 %v287_v46, %v286_v45  ;;  %v271_v52 = vld [vmem:[%s734_s26 + $0x58] sm:$0xff]  ;;  %v302_v53 = vld [vmem:[%s734_s26 + $0x150] sm:$0xff] }
  0x25   : > { %545 = vmatpush3.bf16.msra.mxu0 %v310_v29  ;;  %v303_v54 = vld [vmem:[%s734_s26 + $0x158] sm:$0xff]  ;;  %v258_v55 = vpack.c.bf16 %v255_v50, %v255_v50  ;;  %v288_v56 = vld [vmem:[%s734_s26 + $0xe0] sm:$0xff]  ;;  %v289_v57 = vld [vmem:[%s734_s26 + $0xe8] sm:$0xff]  ;;  %v313_v58 = vpack.c.bf16 %v271_v52, %v270_v49 }
  0x26   : > { %576 = vmatpush3.bf16.msra.mxu1 %v326_v30  ;;  %546 = vmatprep.subr.bf16.mxu0 %v319_v32  ;;  %v329_v59 = vpack.c.bf16 %v303_v54, %v302_v53  ;;  %v272_v60 = vld [vmem:[%s734_s26 + $0x60] sm:$0xff]  ;;  %v322_v61 = vpack.c.bf16 %v289_v57, %v288_v56  ;;  %v273_v62 = vld [vmem:[%s734_s26 + $0x68] sm:$0xff]  ;;  %v290_v1 = vld [vmem:[%s734_s26 + $0xf0] sm:$0xff] }
  0x27   : > { %577 = vmatprep.subr.bf16.mxu1 %v680_v5  ;;  %364 = vmatprep.mubr.bf16.mxu0 %v258_v55  ;;  %v304_v63 = vld [vmem:[%s734_s26 + $0x160] sm:$0xff]  ;;  %v305_v0 = vld [vmem:[%s734_s26 + $0x168] sm:$0xff]  ;;  %v291_v2 = vld [vmem:[%s734_s26 + $0xf8] sm:$0xff]  ;;  %v314_v3 = vpack.c.bf16 %v273_v62, %v272_v60 }
  0x28   : > { %v330_v4 = vpack.c.bf16 %v305_v0, %v304_v63  ;;  %v274_v6 = vld [vmem:[%s734_s26 + $0x70] sm:$0xff]  ;;  %v323_v7 = vpack.c.bf16 %v291_v2, %v290_v1  ;;  %v275_v8 = vld [vmem:[%s734_s26 + $0x78] sm:$0xff]  ;;  %v254_v13 = vld [vmem:[%s729_s22] sm:$0xff] }
  0x29   : > { %547 = vmatpush3.bf16.msra.mxu0 %v311_v38  ;;  %v306_v9 = vld [vmem:[%s734_s26 + $0x170] sm:$0xff]  ;;  %v307_v10 = vld [vmem:[%s734_s26 + $0x178] sm:$0xff]  ;;  %v315_v11 = vpack.c.bf16 %v275_v8, %v274_v6  ;;  %v257_v15 = vpack.c.bf16 %v254_v13, %v254_v13  ;;  %v253_v24 = vld [vmem:[#allocation2] sm:$0xff] }
  0x2a   : > { %578 = vmatpush3.bf16.msra.mxu1 %v327_v39  ;;  %548 = vmatprep.subr.bf16.mxu0 %v320_v41  ;;  %v331_v12 = vpack.c.bf16 %v307_v10, %v306_v9  ;;  %v256_v14 = vld [vmem:[%s729_s22 + $0x10] sm:$0xff]  ;;  %v535_v29 = vld [vmem:[%s840_s2] ss:$0 sm:$0xff] (!%p534_p7) }
  0x2b   : > { %579 = vmatprep.subr.bf16.mxu1 %v680_v5  ;;  %v259_v16 = vpack.c.bf16 %v256_v14, %v256_v14 }
  0x2d   : > { %549 = vmatpush3.bf16.msra.mxu0 %v312_v47 }
  0x2e   : > { %580 = vmatpush3.bf16.msra.mxu1 %v328_v48  ;;  %550 = vmatprep.subr.bf16.mxu0 %v321_v51 }
  0x2f   : > { %581 = vmatprep.subr.bf16.mxu1 %v680_v5 }
  0x31   : > { %551 = vmatpush3.bf16.msra.mxu0 %v313_v58 }
  0x32   : > { %582 = vmatpush3.bf16.msra.mxu1 %v329_v59  ;;  %552 = vmatprep.subr.bf16.mxu0 %v322_v61 }
  0x33   : > { %583 = vmatprep.subr.bf16.mxu1 %v680_v5 }
  0x35   : > { %553 = vmatpush3.bf16.msra.mxu0 %v314_v3 }
  0x36   : > { %584 = vmatpush3.bf16.msra.mxu1 %v330_v4  ;;  %554 = vmatprep.subr.bf16.mxu0 %v323_v7 }
  0x37   : > { %585 = vmatprep.subr.bf16.mxu1 %v680_v5 }
  0x39   : > { %555 = vmatpush3.bf16.msra.mxu0 %v315_v11 }
  0x3a   : > { %586 = vmatpush3.bf16.msra.mxu1 %v331_v12 }
  0x3c   : > { %365 = vmatmul.mubr.bf16.vlgmr.msra.gmra.mrb[0].mxu0 %v257_v15 }
  0x3d   : > { %588 = vmatmul.mubr.bf16.vlgmr.msra.gmra.mrb[0].mxu1 %v259_v16 }
 0x10f   : > { %v556_v17 = vpop.f32.mrb[0].mxu0 }
 0x110   : > { %v406_v18 = vpop.f32.mrb[0].mxu1  ;;  %v557_v19 = vpop.f32.mrb[1].mxu0 }
 0x111   : > { %v589_v20 = vpop.f32.mrb[1].mxu1  ;;  %v558_v21 = vadd.f32 %v557_v19, %v556_v17  ;;  %v559_v22 = vpop.f32.mrb[2].mxu0  ;;  %418 = sbr.rel (%p534_p7) target bundleno = 290 (0x122), region = 40 }
 0x112   : > { %v409_v23 = vpop.f32.mrb[2].mxu1  ;;  %v560_v25 = vpop.f32.mrb[3].mxu0 }
 0x113   : > { %v590_v26 = vpop.f32.mrb[3].mxu1  ;;  %v407_v27 = vadd.f32 %v558_v21, %v406_v18 }
 0x115   : > { %v412_v28 = vadd.f32 %v407_v27, %v253_v24 }
 0x117   : > { %414 = vst.msk [vmem:[#allocation2] sm:$0xff] %vm413_vm2, %v412_v28 }
 0x11e   : > { %v419_v5 = vld [vmem:[#allocation2] sm:$0xff] }
 0x11f   : > { %v427_v30 = vadd.f32 %v535_v29, %v419_v5 }
 0x121   : > { %428 = vst.msk [vmem:[#allocation3] sm:$0xff] %vm413_vm2, %v427_v30 }
 0x122 PF: > { %p803_p8 = scmp.eq.s32.totalorder %s526_s15, 1  ;;  %s682_s30 = smov [#allocation3]  }
 0x123   : > { %s439_s4 = sshll.u32 %s682_s30, 4  ;;  %s440_s4 = int_to_ptr.vmem [resolvable:$true] %s439_s4 }
 0x124   : > { %s625_s5 = scalar_lea.vmem %s440_s4, 128  ;;  %p632_p12 = scmp.lt.s32.totalorder %s440_s4, %s440_s4 }
 0x125   : > { %p626_p9 = scmp.ne.s32.totalorder %s440_s4, %s625_s5  ;;  %p633_p13 = scmp.lt.s32.totalorder %s625_s5, %s625_s5 }
 0x127   : > { %p627_p10 = pnand %p626_p9, %p803_p8  ;;  %p634_p0 = por %p633_p13, %p632_p12 }
 0x129   : > { %p628_p11 = pneg %p627_p10 }
 0x12b   : > { %p635_p1 = pnand %p634_p0, %p628_p11 }
 0x12d   : > { %638 = shalt.err (!%p635_p1)
}
 0x12e   : > { %s639_s8 = scalar_lea.hbm %s841_s3, 128 }
 0x12f   : > { %p640_p2 = scmp.ne.s32.totalorder %s841_s3, %s639_s8  ;;  %p645_p5 = scmp.lt.u32.totalorder %s639_s8, %s841_s3 }
 0x131   : > { %p641_p3 = pnand %p640_p2, %p803_p8 }
 0x133   : > { %p642_p4 = pneg %p641_p3 }
 0x135   : > { %p647_p6 = pnand %p645_p5, %p642_p4 }
 0x137   : > { %650 = shalt.err (!%p647_p6)
}
 0x138   : > { %592 = dma.vmem_to_hbm [thread:$0]  (%p803_p8), %s440_s4, 128, %s841_s3, [#allocation4]  }
 0x139   : > { %664 = dma.done.wait (%p803_p8), [#allocation4], 128  }
 0x13a   : > { %666 = vsyncadd (%p803_p8), [#allocation4], 4294967168 }
 0x13b PF: > { %s14_s14 = sadd.s32 1, %s677_s14   ;;  %s843_s12 = smov %s673_s13 }
 0x13c   : > { %p11_p7 = scmp.ge.s32.totalorder %s14_s14, 4   ;;  %s844_s13 = smov %s846_s16 }
 0x13e   :  { %13 = sbr.rel (!%p11_p7) target bundleno = 2 (0x2), region = 74 }
 0x145   :  { %452 = vsyncpa [#allocation4], 1 }
 0x146   :  { %454 = vsyncpa [#allocation4 + $0x1], 1 }

</bundles_post_ra>
